<compile_context>
chip_gen: v5e
topology: v5e:2x2
jax: 0.10.0
libtpu: 0.0.40
codegen_flags: <defaults>
</compile_context>

<pallas_src>
import functools

import jax
import jax.numpy as jnp
from jax import lax
from jax.experimental import pallas as pl
from jax.experimental.pallas import tpu as pltpu


# ----------------------------------------------------------------------------
# Pallas kernels (channel-major, spatially-flattened "extended width" layout)
# ----------------------------------------------------------------------------
# Flat padded layout: the padded image has H+3 rows of width Wp = W+2 (1 px
# zero border plus one extra all-zero bottom row), flattened to NPAD =
# (H+3)*Wp lanes.  A 3x3 tap (dy, dx) of every output pixel is then a
# *contiguous* window of length HWE = H*Wp starting at dy*Wp + dx; columns
# {W, W+1} of each output row are wrap-around garbage, dropped by the wrapper.


def _stacked_conv3x3(src_ref, k_ref, b_ref, stk_ref, o_ref, *, cin, Wp, HWE):
    """3x3 conv of a flat padded (cin, NPAD) buffer as ONE K=9*cin matmul.

    Builds an im2col-style stacked buffer (9*cin, HWE): 9 lane-dense stores,
    so each tap's lane shift is paid exactly once, then a single MXU matmul
    with the bias folded in via one broadcast add.
    """
    for t in range(9):
        dy, dx = divmod(t, 3)
        off = dy * Wp + dx
        stk_ref[t * cin:(t + 1) * cin, :] = src_ref[:, off:off + HWE]
    o_ref[...] = (jnp.dot(k_ref[...], stk_ref[...],
                          preferred_element_type=jnp.float32)
                  + b_ref[...]).astype(o_ref.dtype)


def _conv1x1_conv3x3_kernel(x_ref, k0_ref, b0_ref, k1_ref, b1_ref, o_ref,
                            ypad_ref, stk_ref, *, H, W, Mid):
    # x_ref:    (Cin, NPAD)   zero-padded flat input (batch dim squeezed)
    # k0_ref:   (Mid, Cin)    1x1 weight      b0_ref: (Mid, 1)
    # k1_ref:   (Out, 9*Mid)  3x3 weight, column t*Mid+m = k1[o, m, dy_t, dx_t]
    # b1_ref:   (Out, 1)
    # o_ref:    (Out, HWE)    extended output
    # ypad_ref: VMEM (Mid, NPAD)   stk_ref: VMEM (9*Mid, HWE)
    Wp = W + 2
    HWE = H * Wp

    # Stage 1: 1x1 conv over the zero-padded input + b0 as one MXU matmul.
    # Border pixels are conv1x1(0)+b0 = b0, which is exactly the module's
    # "zero-pad y0 then overwrite the 1px border with b0" buffer.
    ypad_ref[...] = (
        jnp.dot(k0_ref[...], x_ref[...], preferred_element_type=jnp.float32)
        + b0_ref[...])

    # Stage 2: stacked buffer + single folded K=9*Mid matmul.
    _stacked_conv3x3(ypad_ref, k1_ref, b1_ref, stk_ref, o_ref,
                     cin=Mid, Wp=Wp, HWE=HWE)


def _rep_conv3x3_kernel(x_ref, keff_ref, beff_ref, o_ref, stk_ref, *, H, W, Cin):
    # Reparameterized inference path: a single effective 3x3 conv on the
    # zero-padded input (k0/b0 already folded into keff/beff in the wrapper).
    Wp = W + 2
    HWE = H * Wp
    _stacked_conv3x3(x_ref, keff_ref, beff_ref, stk_ref, o_ref,
                     cin=Cin, Wp=Wp, HWE=HWE)


def _conv1x1_mask3x3_kernel(x_ref, k0_ref, b0_ref, w_ref, b1_ref, o_ref,
                            ypad_ref, *, H, W, Out):
    # Depthwise variant ('conv1x1-sobelx' / 'conv1x1-sobely' / 'conv1x1-laplacian').
    # w_ref: (Out, 9) per-channel per-tap weight = scale * mask.  Taps stay on
    # the VPU (a depthwise matmul would waste the MXU); the weight ref is read
    # once before the loop and accumulation goes through the VMEM output ref.
    Wp = W + 2
    HWE = H * Wp

    ypad_ref[...] = (
        jnp.dot(k0_ref[...], x_ref[...], preferred_element_type=jnp.float32)
        + b0_ref[...])

    w = w_ref[...]                                        # (Out, 9), read once
    o_ref[...] = jnp.broadcast_to(b1_ref[...], (Out, HWE)).astype(o_ref.dtype)
    for t in range(9):
        dy, dx = divmod(t, 3)
        off = dy * Wp + dx
        o_ref[...] = (o_ref[...]
                      + w[:, t:t + 1] * ypad_ref[:, off:off + HWE]
                      ).astype(o_ref.dtype)


# ----------------------------------------------------------------------------
# Wrappers (NCHW in / NCHW out, like the PyTorch module)
# ----------------------------------------------------------------------------

def _flatten_pad_nchw(x_nchw):
    # Zero-pad spatially by 1 on each side (+1 extra bottom row so the
    # extended-width tap windows stay in bounds), flatten spatial dims.
    # TODO(synk): do this pad in-kernel to save one HBM pass over the input.
    xpad = jnp.pad(x_nchw, ((0, 0), (0, 0), (1, 2), (1, 1)))
    N, C, Hp, Wp = xpad.shape
    return xpad.reshape(N, C, Hp * Wp)


def _vmem_limit(need_bytes):
    # Ceiling ~72% of physical VMEM when queryable; 44 MiB fallback, which is
    # safe on v7x (64 MiB physical) and conservative on v5e/v6e (128 MiB).
    try:
        cap = int(pltpu.get_tpu_info().vmem_capacity_bytes * 0.72)
    except Exception:
        cap = 44 << 20
    want = max(int(1.3 * need_bytes), 32 << 20)
    return int(min(want, max(cap, 32 << 20)))


def seqconv_conv1x1_conv3x3(x_nchw, k0, b0, k1, b1):
    """seq_type='conv1x1-conv3x3', bias_type=True, groups=1 (two-stage path)."""
    N, Cin, H, W = x_nchw.shape
    Mid = k0.shape[0]
    Out = k1.shape[0]
    Wp = W + 2
    HWE = H * Wp
    NPAD = (H + 3) * Wp

    x_flat = _flatten_pad_nchw(x_nchw.astype(jnp.float32))          # (N,Cin,NPAD)
    k0m = k0[:, :, 0, 0].astype(jnp.float32)                        # (Mid, Cin)
    b0m = b0.reshape(Mid, 1).astype(jnp.float32)
    # (Out, Mid, 3, 3) -> (Out, 9*Mid); column index = (dy*3+dx)*Mid + m.
    k1f = jnp.transpose(k1, (0, 2, 3, 1)).reshape(Out, 9 * Mid).astype(jnp.float32)
    b1m = b1.reshape(Out, 1).astype(jnp.float32)

    need = 4 * (2 * (Cin * NPAD + Out * HWE)                        # dbuf in/out
                + 2 * (Mid * Cin + Mid + Out * 9 * Mid + Out)       # weights
                + Mid * NPAD + 9 * Mid * HWE)                       # scratch
    cost = pl.CostEstimate(
        flops=int(N * (2 * Mid * Cin * NPAD + 2 * Out * 9 * Mid * HWE)),
        transcendentals=0,
        bytes_accessed=int(4 * (N * Cin * NPAD + N * Out * HWE
                                + Mid * Cin + 9 * Out * Mid + Mid + Out)))

    kernel = functools.partial(_conv1x1_conv3x3_kernel, H=H, W=W, Mid=Mid)
    y = pl.pallas_call(
        kernel,
        out_shape=jax.ShapeDtypeStruct((N, Out, HWE), jnp.float32),
        grid_spec=pltpu.PrefetchScalarGridSpec(
            num_scalar_prefetch=0,
            grid=(N,),
            in_specs=[
                pl.BlockSpec((None, Cin, NPAD), lambda n: (n, 0, 0)),
                pl.BlockSpec((Mid, Cin), lambda n: (0, 0)),
                pl.BlockSpec((Mid, 1), lambda n: (0, 0)),
                pl.BlockSpec((Out, 9 * Mid), lambda n: (0, 0)),
                pl.BlockSpec((Out, 1), lambda n: (0, 0)),
            ],
            out_specs=pl.BlockSpec((None, Out, HWE), lambda n: (n, 0, 0)),
            scratch_shapes=[pltpu.VMEM((Mid, NPAD), jnp.float32),
                            pltpu.VMEM((9 * Mid, HWE), jnp.float32)],
        ),
        compiler_params=pltpu.CompilerParams(
            dimension_semantics=("parallel",),
            vmem_limit_bytes=_vmem_limit(need)),
        cost_estimate=cost,
    )(x_flat, k0m, b0m, k1f, b1m)

    # TODO(synk): drop the 2 wrap-around columns in-kernel to save this pass.
    return y.reshape(N, Out, H, Wp)[:, :, :, :W]


def seqconv_conv1x1_conv3x3_rep(x_nchw, k0, b0, k1, b1):
    """Inference path: k0/b0 folded into an effective 3x3 conv (exact identity
    with the module's forward given the b0-border trick); K = 9*Cin."""
    N, Cin, H, W = x_nchw.shape
    Mid = k0.shape[0]
    Out = k1.shape[0]
    Wp = W + 2
    HWE = H * Wp
    NPAD = (H + 3) * Wp

    x_flat = _flatten_pad_nchw(x_nchw.astype(jnp.float32))
    k0m = k0[:, :, 0, 0].astype(jnp.float32)                        # (Mid, Cin)
    k1t = jnp.transpose(k1, (2, 3, 0, 1)).reshape(9, Out, Mid).astype(jnp.float32)
    # K_eff[o, t*Cin+c] = sum_m k1[o,m,t] k0[m,c];  b_eff = b1 + sum_{t,m} k1[o,m,t] b0[m]
    keff = jnp.einsum('tom,mc->otc', k1t, k0m).reshape(Out, 9 * Cin)
    beff = (b1.astype(jnp.float32)
            + jnp.einsum('tom,m->o', k1t, b0.astype(jnp.float32))).reshape(Out, 1)

    need = 4 * (2 * (Cin * NPAD + Out * HWE) + 2 * (Out * 9 * Cin + Out)
                + 9 * Cin * HWE)
    cost = pl.CostEstimate(
        flops=int(N * 2 * Out * 9 * Cin * HWE),
        transcendentals=0,
        bytes_accessed=int(4 * (N * Cin * NPAD + N * Out * HWE
                                + Out * 9 * Cin + Out)))

    kernel = functools.partial(_rep_conv3x3_kernel, H=H, W=W, Cin=Cin)
    y = pl.pallas_call(
        kernel,
        out_shape=jax.ShapeDtypeStruct((N, Out, HWE), jnp.float32),
        grid_spec=pltpu.PrefetchScalarGridSpec(
            num_scalar_prefetch=0,
            grid=(N,),
            in_specs=[
                pl.BlockSpec((None, Cin, NPAD), lambda n: (n, 0, 0)),
                pl.BlockSpec((Out, 9 * Cin), lambda n: (0, 0)),
                pl.BlockSpec((Out, 1), lambda n: (0, 0)),
            ],
            out_specs=pl.BlockSpec((None, Out, HWE), lambda n: (n, 0, 0)),
            scratch_shapes=[pltpu.VMEM((9 * Cin, HWE), jnp.float32)],
        ),
        compiler_params=pltpu.CompilerParams(
            dimension_semantics=("parallel",),
            vmem_limit_bytes=_vmem_limit(need)),
        cost_estimate=cost,
    )(x_flat, keff, beff)

    return y.reshape(N, Out, H, Wp)[:, :, :, :W]


def seqconv_conv1x1_mask3x3(x_nchw, k0, b0, w, bias):
    """seq_type in {'conv1x1-sobelx','conv1x1-sobely','conv1x1-laplacian'},
    bias_type=True. `w` = scale * mask, shape (Out, 1, 3, 3)."""
    N, Cin, H, W = x_nchw.shape
    Out = k0.shape[0]
    Wp = W + 2
    HWE = H * Wp
    NPAD = (H + 3) * Wp

    x_flat = _flatten_pad_nchw(x_nchw.astype(jnp.float32))
    k0m = k0[:, :, 0, 0].astype(jnp.float32)                        # (Out, Cin)
    b0m = b0.reshape(Out, 1).astype(jnp.float32)
    wt = w.reshape(Out, 9).astype(jnp.float32)                      # tap-minor
    b1m = bias.reshape(Out, 1).astype(jnp.float32)

    need = 4 * (2 * (Cin * NPAD + Out * HWE)
                + 2 * (Out * Cin + 9 * Out + 2 * Out) + Out * NPAD)
    cost = pl.CostEstimate(
        flops=int(N * (2 * Out * Cin * NPAD + 2 * 9 * Out * HWE)),
        transcendentals=0,
        bytes_accessed=int(4 * (N * Cin * NPAD + N * Out * HWE
                                + Out * Cin + 11 * Out)))

    kernel = functools.partial(_conv1x1_mask3x3_kernel, H=H, W=W, Out=Out)
    y = pl.pallas_call(
        kernel,
        out_shape=jax.ShapeDtypeStruct((N, Out, HWE), jnp.float32),
        grid_spec=pltpu.PrefetchScalarGridSpec(
            num_scalar_prefetch=0,
            grid=(N,),
            in_specs=[
                pl.BlockSpec((None, Cin, NPAD), lambda n: (n, 0, 0)),
                pl.BlockSpec((Out, Cin), lambda n: (0, 0)),
                pl.BlockSpec((Out, 1), lambda n: (0, 0)),
                pl.BlockSpec((Out, 9), lambda n: (0, 0)),
                pl.BlockSpec((Out, 1), lambda n: (0, 0)),
            ],
            out_specs=pl.BlockSpec((None, Out, HWE), lambda n: (n, 0, 0)),
            scratch_shapes=[pltpu.VMEM((Out, NPAD), jnp.float32)],
        ),
        compiler_params=pltpu.CompilerParams(
            dimension_semantics=("parallel",),
            vmem_limit_bytes=_vmem_limit(need)),
        cost_estimate=cost,
    )(x_flat, k0m, b0m, wt, b1m)

    return y.reshape(N, Out, H, Wp)[:, :, :, :W]


# ----------------------------------------------------------------------------
# Plain-JAX references (for correctness check)
# ----------------------------------------------------------------------------

_DN = ('NCHW', 'OIHW', 'NCHW')


def _pad_with_b0_border(y0, b0):
    y0 = jnp.pad(y0, ((0, 0), (0, 0), (1, 1), (1, 1)))
    bpad = b0[None, :, None, None]
    y0 = y0.at[:, :, 0:1, :].set(bpad)
    y0 = y0.at[:, :, -1:, :].set(bpad)
    y0 = y0.at[:, :, :, 0:1].set(bpad)
    y0 = y0.at[:, :, :, -1:].set(bpad)
    return y0


def _ref_conv1x1_conv3x3(x, k0, b0, k1, b1):
    y0 = lax.conv_general_dilated(x, k0, (1, 1), 'VALID', dimension_numbers=_DN)
    y0 = y0 + b0[None, :, None, None]
    y0 = _pad_with_b0_border(y0, b0)
    y1 = lax.conv_general_dilated(y0, k1, (1, 1), 'VALID', dimension_numbers=_DN)
    return y1 + b1[None, :, None, None]


def _ref_conv1x1_mask3x3(x, k0, b0, w, bias):
    out_planes = w.shape[0]
    y0 = lax.conv_general_dilated(x, k0, (1, 1), 'VALID', dimension_numbers=_DN)
    y0 = y0 + b0[None, :, None, None]
    y0 = _pad_with_b0_border(y0, b0)
    y1 = lax.conv_general_dilated(y0, w, (1, 1), 'VALID', dimension_numbers=_DN,
                                  feature_group_count=out_planes)
    return y1 + bias[None, :, None, None]


def make_mask(seq_type, out_planes):
    if seq_type == 'conv1x1-sobelx':
        base = jnp.array([[1., 0., -1.], [2., 0., -2.], [1., 0., -1.]], jnp.float32)
    elif seq_type == 'conv1x1-sobely':
        base = jnp.array([[1., 2., 1.], [0., 0., 0.], [-1., -2., -1.]], jnp.float32)
    elif seq_type == 'conv1x1-laplacian':
        base = jnp.array([[0., 1., 0.], [1., -4., 1.], [0., 1., 0.]], jnp.float32)
    else:
        raise ValueError('the type of seqconv is not supported!')
    return jnp.broadcast_to(base[None, None], (out_planes, 1, 3, 3))


# ----------------------------------------------------------------------------
# Demo / test
# ----------------------------------------------------------------------------

if __name__ == "__main__":
    key = jax.random.PRNGKey(0)
    ks = jax.random.split(key, 10)

    # Small shapes consistent with the module (NCHW input).
    N, Cin, H, W = 2, 4, 16, 16
    out_planes, depth_multiplier = 8, 2
    Mid = int(out_planes * depth_multiplier)

    x = jax.random.normal(ks[0], (N, Cin, H, W), jnp.float32)

    # ---- seq_type = 'conv1x1-conv3x3', bias_type=True, groups=1 ----
    k0 = jax.random.normal(ks[1], (Mid, Cin, 1, 1), jnp.float32) * 0.1
    b0 = jax.random.normal(ks[2], (Mid,), jnp.float32) * 0.1
    k1 = jax.random.normal(ks[3], (out_planes, Mid, 3, 3), jnp.float32) * 0.1
    b1 = jax.random.normal(ks[4], (out_planes,), jnp.float32) * 0.1

    y_ref = _ref_conv1x1_conv3x3(x, k0, b0, k1, b1)

    y = jax.block_until_ready(seqconv_conv1x1_conv3x3(x, k0, b0, k1, b1))
    assert y.shape == (N, out_planes, H, W)
    assert jnp.allclose(y, y_ref, atol=2e-4, rtol=2e-4), \
        f"conv1x1-conv3x3 mismatch: {jnp.max(jnp.abs(y - y_ref))}"

    # Reparameterized inference path (exact identity with the module forward).
    y_rep = jax.block_until_ready(seqconv_conv1x1_conv3x3_rep(x, k0, b0, k1, b1))
    assert y_rep.shape == (N, out_planes, H, W)
    assert jnp.allclose(y_rep, y_ref, atol=2e-4, rtol=2e-4), \
        f"conv1x1-conv3x3 rep mismatch: {jnp.max(jnp.abs(y_rep - y_ref))}"

    # ---- seq_type = 'conv1x1-sobelx', bias_type=True ----
    k0s = jax.random.normal(ks[5], (out_planes, Cin, 1, 1), jnp.float32) * 0.1
    b0s = jax.random.normal(ks[6], (out_planes,), jnp.float32) * 0.1
    scale = jax.random.normal(ks[7], (out_planes, 1, 1, 1), jnp.float32) * 0.001
    bias = jax.random.normal(ks[8], (out_planes,), jnp.float32) * 0.001
    w = scale * make_mask('conv1x1-sobelx', out_planes)   # (Out, 1, 3, 3)

    y2 = jax.block_until_ready(seqconv_conv1x1_mask3x3(x, k0s, b0s, w, bias))
    y2_ref = _ref_conv1x1_mask3x3(x, k0s, b0s, w, bias)
    assert y2.shape == (N, out_planes, H, W)
    assert jnp.allclose(y2, y2_ref, atol=2e-4, rtol=2e-4), \
        f"conv1x1-sobelx mismatch: {jnp.max(jnp.abs(y2 - y2_ref))}"

    # ---- seq_type = 'conv1x1-laplacian' (exercise another mask) ----
    wl = scale * make_mask('conv1x1-laplacian', out_planes)
    y3 = jax.block_until_ready(seqconv_conv1x1_mask3x3(x, k0s, b0s, wl, bias))
    y3_ref = _ref_conv1x1_mask3x3(x, k0s, b0s, wl, bias)
    assert jnp.allclose(y3, y3_ref, atol=2e-4, rtol=2e-4), \
        f"conv1x1-laplacian mismatch: {jnp.max(jnp.abs(y3 - y3_ref))}"

    print("KERNEL_OK")
</pallas_src>

<mosaic_0001>
module attributes {stable_mosaic.version = 11 : i64} {
  func.func @_conv1x1_conv3x3_kernel(%arg0: i32, %arg1: memref<1x4x342xf32, #tpu.memory_space<vmem>>, %arg2: memref<16x4xf32, #tpu.memory_space<vmem>>, %arg3: memref<16x1xf32, #tpu.memory_space<vmem>>, %arg4: memref<8x144xf32, #tpu.memory_space<vmem>>, %arg5: memref<8x1xf32, #tpu.memory_space<vmem>>, %arg6: memref<1x8x288xf32, #tpu.memory_space<vmem>>, %arg7: memref<16x342xf32, #tpu.memory_space<vmem>>, %arg8: memref<144x288xf32, #tpu.memory_space<vmem>>) attributes {dimension_semantics = [#tpu.dimension_semantics<parallel>], iteration_bounds = array<i64: 2>, scalar_prefetch = 0 : i64, scratch_operands = 2 : i64, tpu.core_type = #tpu.core_type<tc>, window_params = [{transform_indices = @transform_0, window_bounds = array<i64: 1, 4, 342>}, {pipeline_mode = #tpu.pipeline_mode<synchronous>, transform_indices = @transform_1, window_bounds = array<i64: 16, 4>}, {pipeline_mode = #tpu.pipeline_mode<synchronous>, transform_indices = @transform_2, window_bounds = array<i64: 16, 1>}, {pipeline_mode = #tpu.pipeline_mode<synchronous>, transform_indices = @transform_3, window_bounds = array<i64: 8, 144>}, {pipeline_mode = #tpu.pipeline_mode<synchronous>, transform_indices = @transform_4, window_bounds = array<i64: 8, 1>}, {transform_indices = @transform_5, window_bounds = array<i64: 1, 8, 288>}]} {
    %c0 = arith.constant 0 : index
    %c0_0 = arith.constant 0 : index
    %0 = vector.load %arg2[%c0, %c0_0] : memref<16x4xf32, #tpu.memory_space<vmem>>, vector<16x4xf32>
    %c0_1 = arith.constant 0 : index
    %c0_2 = arith.constant 0 : index
    %c0_3 = arith.constant 0 : index
    %1 = vector.load %arg1[%c0_1, %c0_2, %c0_3] : memref<1x4x342xf32, #tpu.memory_space<vmem>>, vector<1x4x342xf32>
    %2 = vector.shape_cast %1 : vector<1x4x342xf32> to vector<4x342xf32>
    %cst = arith.constant dense<0.000000e+00> : vector<16x342xf32>
    %3 = tpu.matmul %0, %2, %cst {dimension_numbers = #tpu.dot_dimension_numbers<[1], [0], [0], [1], [0, 0, 1, 1], [], []>} : vector<16x4xf32>, vector<4x342xf32>, vector<16x342xf32> -> vector<16x342xf32>
    %c0_4 = arith.constant 0 : index
    %c0_5 = arith.constant 0 : index
    %4 = vector.load %arg3[%c0_4, %c0_5] : memref<16x1xf32, #tpu.memory_space<vmem>>, vector<16x1xf32>
    %5 = vector.broadcast %4 : vector<16x1xf32> to vector<16x342xf32>
    %6 = arith.addf %3, %5 : vector<16x342xf32>
    %c0_6 = arith.constant 0 : index
    %c0_7 = arith.constant 0 : index
    %7 = vector.load %arg7[%c0_6, %c0_7] : memref<16x342xf32, #tpu.memory_space<vmem>>, vector<16x342xf32>
    tpu.vector_store %arg7[%c0_6, %c0_7], %6 {strides = array<i32>} : memref<16x342xf32, #tpu.memory_space<vmem>>, vector<16x342xf32>,
    %c0_8 = arith.constant 0 : index
    %c0_9 = arith.constant 0 : index
    %8 = vector.load %arg7[%c0_8, %c0_9] : memref<16x342xf32, #tpu.memory_space<vmem>>, vector<16x288xf32>
    %c0_10 = arith.constant 0 : index
    %c0_11 = arith.constant 0 : index
    %9 = vector.load %arg8[%c0_10, %c0_11] : memref<144x288xf32, #tpu.memory_space<vmem>>, vector<16x288xf32>
    tpu.vector_store %arg8[%c0_10, %c0_11], %8 {strides = array<i32>} : memref<144x288xf32, #tpu.memory_space<vmem>>, vector<16x288xf32>,
    %c0_12 = arith.constant 0 : index
    %c1 = arith.constant 1 : index
    %10 = vector.load %arg7[%c0_12, %c1] : memref<16x342xf32, #tpu.memory_space<vmem>>, vector<16x288xf32>
    %c16 = arith.constant 16 : index
    %c0_13 = arith.constant 0 : index
    %11 = vector.load %arg8[%c16, %c0_13] : memref<144x288xf32, #tpu.memory_space<vmem>>, vector<16x288xf32>
    tpu.vector_store %arg8[%c16, %c0_13], %10 {strides = array<i32>} : memref<144x288xf32, #tpu.memory_space<vmem>>, vector<16x288xf32>,
    %c0_14 = arith.constant 0 : index
    %c2 = arith.constant 2 : index
    %12 = vector.load %arg7[%c0_14, %c2] : memref<16x342xf32, #tpu.memory_space<vmem>>, vector<16x288xf32>
    %c32 = arith.constant 32 : index
    %c0_15 = arith.constant 0 : index
    %13 = vector.load %arg8[%c32, %c0_15] : memref<144x288xf32, #tpu.memory_space<vmem>>, vector<16x288xf32>
    tpu.vector_store %arg8[%c32, %c0_15], %12 {strides = array<i32>} : memref<144x288xf32, #tpu.memory_space<vmem>>, vector<16x288xf32>,
    %c0_16 = arith.constant 0 : index
    %c18 = arith.constant 18 : index
    %14 = vector.load %arg7[%c0_16, %c18] : memref<16x342xf32, #tpu.memory_space<vmem>>, vector<16x288xf32>
    %c48 = arith.constant 48 : index
    %c0_17 = arith.constant 0 : index
    %15 = vector.load %arg8[%c48, %c0_17] : memref<144x288xf32, #tpu.memory_space<vmem>>, vector<16x288xf32>
    tpu.vector_store %arg8[%c48, %c0_17], %14 {strides = array<i32>} : memref<144x288xf32, #tpu.memory_space<vmem>>, vector<16x288xf32>,
    %c0_18 = arith.constant 0 : index
    %c19 = arith.constant 19 : index
    %16 = vector.load %arg7[%c0_18, %c19] : memref<16x342xf32, #tpu.memory_space<vmem>>, vector<16x288xf32>
    %c64 = arith.constant 64 : index
    %c0_19 = arith.constant 0 : index
    %17 = vector.load %arg8[%c64, %c0_19] : memref<144x288xf32, #tpu.memory_space<vmem>>, vector<16x288xf32>
    tpu.vector_store %arg8[%c64, %c0_19], %16 {strides = array<i32>} : memref<144x288xf32, #tpu.memory_space<vmem>>, vector<16x288xf32>,
    %c0_20 = arith.constant 0 : index
    %c20 = arith.constant 20 : index
    %18 = vector.load %arg7[%c0_20, %c20] : memref<16x342xf32, #tpu.memory_space<vmem>>, vector<16x288xf32>
    %c80 = arith.constant 80 : index
    %c0_21 = arith.constant 0 : index
    %19 = vector.load %arg8[%c80, %c0_21] : memref<144x288xf32, #tpu.memory_space<vmem>>, vector<16x288xf32>
    tpu.vector_store %arg8[%c80, %c0_21], %18 {strides = array<i32>} : memref<144x288xf32, #tpu.memory_space<vmem>>, vector<16x288xf32>,
    %c0_22 = arith.constant 0 : index
    %c36 = arith.constant 36 : index
    %20 = vector.load %arg7[%c0_22, %c36] : memref<16x342xf32, #tpu.memory_space<vmem>>, vector<16x288xf32>
    %c96 = arith.constant 96 : index
    %c0_23 = arith.constant 0 : index
    %21 = vector.load %arg8[%c96, %c0_23] : memref<144x288xf32, #tpu.memory_space<vmem>>, vector<16x288xf32>
    tpu.vector_store %arg8[%c96, %c0_23], %20 {strides = array<i32>} : memref<144x288xf32, #tpu.memory_space<vmem>>, vector<16x288xf32>,
    %c0_24 = arith.constant 0 : index
    %c37 = arith.constant 37 : index
    %22 = vector.load %arg7[%c0_24, %c37] : memref<16x342xf32, #tpu.memory_space<vmem>>, vector<16x288xf32>
    %c112 = arith.constant 112 : index
    %c0_25 = arith.constant 0 : index
    %23 = vector.load %arg8[%c112, %c0_25] : memref<144x288xf32, #tpu.memory_space<vmem>>, vector<16x288xf32>
    tpu.vector_store %arg8[%c112, %c0_25], %22 {strides = array<i32>} : memref<144x288xf32, #tpu.memory_space<vmem>>, vector<16x288xf32>,
    %c0_26 = arith.constant 0 : index
    %c38 = arith.constant 38 : index
    %24 = vector.load %arg7[%c0_26, %c38] : memref<16x342xf32, #tpu.memory_space<vmem>>, vector<16x288xf32>
    %c128 = arith.constant 128 : index
    %c0_27 = arith.constant 0 : index
    %25 = vector.load %arg8[%c128, %c0_27] : memref<144x288xf32, #tpu.memory_space<vmem>>, vector<16x288xf32>
    tpu.vector_store %arg8[%c128, %c0_27], %24 {strides = array<i32>} : memref<144x288xf32, #tpu.memory_space<vmem>>, vector<16x288xf32>,
    %c0_28 = arith.constant 0 : index
    %c0_29 = arith.constant 0 : index
    %26 = vector.load %arg4[%c0_28, %c0_29] : memref<8x144xf32, #tpu.memory_space<vmem>>, vector<8x144xf32>
    %c0_30 = arith.constant 0 : index
    %c0_31 = arith.constant 0 : index
    %27 = vector.load %arg8[%c0_30, %c0_31] : memref<144x288xf32, #tpu.memory_space<vmem>>, vector<144x288xf32>
    %cst_32 = arith.constant dense<0.000000e+00> : vector<8x288xf32>
    %28 = tpu.matmul %26, %27, %cst_32 {dimension_numbers = #tpu.dot_dimension_numbers<[1], [0], [0], [1], [0, 0, 1, 1], [], []>} : vector<8x144xf32>, vector<144x288xf32>, vector<8x288xf32> -> vector<8x288xf32>
    %c0_33 = arith.constant 0 : index
    %c0_34 = arith.constant 0 : index
    %29 = vector.load %arg5[%c0_33, %c0_34] : memref<8x1xf32, #tpu.memory_space<vmem>>, vector<8x1xf32>
    %30 = vector.broadcast %29 : vector<8x1xf32> to vector<8x288xf32>
    %31 = arith.addf %28, %30 : vector<8x288xf32>
    %c0_35 = arith.constant 0 : index
    %c0_36 = arith.constant 0 : index
    %c0_37 = arith.constant 0 : index
    %32 = vector.load %arg6[%c0_35, %c0_36, %c0_37] : memref<1x8x288xf32, #tpu.memory_space<vmem>>, vector<1x8x288xf32>
    %33 = vector.shape_cast %32 : vector<1x8x288xf32> to vector<8x288xf32>
    %34 = vector.shape_cast %31 : vector<8x288xf32> to vector<1x8x288xf32>
    tpu.vector_store %arg6[%c0_35, %c0_36, %c0_37], %34 {strides = array<i32>} : memref<1x8x288xf32, #tpu.memory_space<vmem>>, vector<1x8x288xf32>,
    return
  }
  func.func @transform_0(%arg0: i32) -> (i32, i32, i32) {
    %c0_i32 = arith.constant 0 : i32
    %c0_i32_0 = arith.constant 0 : i32
    %c0_i32_1 = arith.constant 0 : i32
    return %arg0, %c0_i32, %c0_i32_0 : i32, i32, i32
  }
  func.func @transform_1(%arg0: i32) -> (i32, i32) {
    %c0_i32 = arith.constant 0 : i32
    %c0_i32_0 = arith.constant 0 : i32
    %c0_i32_1 = arith.constant 0 : i32
    return %c0_i32, %c0_i32_0 : i32, i32
  }
  func.func @transform_2(%arg0: i32) -> (i32, i32) {
    %c0_i32 = arith.constant 0 : i32
    %c0_i32_0 = arith.constant 0 : i32
    %c0_i32_1 = arith.constant 0 : i32
    return %c0_i32, %c0_i32_0 : i32, i32
  }
  func.func @transform_3(%arg0: i32) -> (i32, i32) {
    %c0_i32 = arith.constant 0 : i32
    %c0_i32_0 = arith.constant 0 : i32
    %c0_i32_1 = arith.constant 0 : i32
    return %c0_i32, %c0_i32_0 : i32, i32
  }
  func.func @transform_4(%arg0: i32) -> (i32, i32) {
    %c0_i32 = arith.constant 0 : i32
    %c0_i32_0 = arith.constant 0 : i32
    %c0_i32_1 = arith.constant 0 : i32
    return %c0_i32, %c0_i32_0 : i32, i32
  }
  func.func @transform_5(%arg0: i32) -> (i32, i32, i32) {
    %c0_i32 = arith.constant 0 : i32
    %c0_i32_0 = arith.constant 0 : i32
    %c0_i32_1 = arith.constant 0 : i32
    return %arg0, %c0_i32, %c0_i32_0 : i32, i32, i32
  }
}

</mosaic_0001>

<bundles_post_ra>
// kernel: tpu_custom_call.1
= control target key start
LH: loop header
LB: loop body
LE: loop exit
PB: predicated region body
PF: predicated region fallthrough
CT: control target
= control target key end

     0   :  { %10 = vsyncpa [#allocation5], 0  ;;  %s1429_s0 = inlined_call_operand.vmem [shape: f32[2,4,342], index: 0, kind: input, shape index: {}]   ;;  %s1430_s1 = inlined_call_operand.vmem [shape: f32[16,4], index: 1, kind: input, shape index: {}]   ;;  %s1431_s2 = inlined_call_operand.vmem [shape: f32[16,1], index: 2, kind: input, shape index: {}]   ;;  %s1432_s3 = inlined_call_operand.vmem [shape: f32[8,144], index: 3, kind: input, shape index: {}]   ;;  %s1433_s4 = inlined_call_operand.vmem [shape: f32[8,1], index: 4, kind: input, shape index: {}]   ;;  %s1434_s5 = inlined_call_operand.hbm [shape: f32[2,8,288], index: 5, kind: output, shape index: {}]  }
   0x1   :  { %12 = vsyncpa [#allocation5 + $0x1], 0  ;;  %s1119_s18 = smov 0   ;;  %s1121_s19 = smov 0  }
   0x2   :  { %s1123_s20 = smov 0   ;;  %s1125_s21 = smov 0  }
   0x3 LB: > { %s1140_s22 = sadd.s32 4294967295, %s1078_s21   ;;  %s943_s23 = sadd.s32 4294967294, %s1078_s21   ;;  %s1078_s21 = sphi %s1125_s21, %s1440_s21   ;;  %s1074_s20 = sphi %s1123_s20, %s1439_s20   ;;  %s1070_s19 = sphi %s1121_s19, %s1438_s19   ;;  %s1066_s18 = sphi %s1119_s18, %s1437_s18  }
   0x4   : > { %s1144_s24 = sadd.s32 1, %s1078_s21   ;;  %s135_s25 = sadd.s32 1, %s1074_s20 }
   0x5   : > { %s132_s26 = ssub.s32 %s1078_s21, %s1144_s24  ;;  %p145_p0 = scmp.ne.s32.totalorder %s1074_s20, %s1070_s19 }
   0x6   : > { %p133_p1 = scmp.eq.s32.totalorder %s132_s26, 0  ;;  %p146_p2 = scmp.eq.s32.totalorder %s1140_s22, 1 }
   0x7   : > { %p151_p3 = scmp.ne.s32.totalorder %s1070_s19, %s1066_s18  ;;  %p152_p4 = scmp.eq.s32.totalorder %s943_s23, 1 }
   0x8   : > { %s1155_s27 = scalar_select %p133_p1, %s1074_s20, %s135_s25  }
   0x9   : > { %p1157_p5 = por %p146_p2, %p145_p0  ;;  %p1161_p6 = por %p152_p4, %p151_p3 }
   0xa   : > { %p946_p7 = scmp.ge.s32.totalorder %s1078_s21, 1  ;;  %p190_p8 = scmp.lt.s32.totalorder %s1078_s21, 3 }
   0xc   : > { %p191_p9 = pnand %p946_p7, %p190_p8 }
   0xd   : > { %p218_p10 = scmp.lt.s32.totalorder (!%p191_p9), %s1140_s22, 1  ;;  %s1081_s23 = smov (!%p191_p9), 90  }
   0xe   : > { %194 = sbr.rel (%p191_p9) target bundleno = 551 (0x227), region = 40  ;;  %s1082_s25 = smov (!%p191_p9), 91  }
   0xf   : > { %s1083_s26 = smov (!%p191_p9), 92   ;;  %s1084_s30 = smov (!%p191_p9), 110  }
  0x10   : > { %s1085_s6 = smov (!%p191_p9), 108   ;;  %s1088_s9 = smov (!%p191_p9), 127  }
  0x11   : > { %s215_s16 = sand.u32 (!%p191_p9), 1, %s1070_s19   ;;  %s1036_s13 = scalar_lea.hbm (!%p191_p9), %s1434_s5, 48 }
  0x12   : > { %s963_s17 = smul.u32 (!%p191_p9), 24, %s215_s16 }
  0x13   : > { %v228_v0 = vld [vmem:[%s1431_s2 + $0x8] sm:$0xff]  ;;  %v1080_v1 = vmov 0   ;;  %s219_s7 = scalar_select %p218_p10, %s1140_s22, 1  ;;  %v227_v4 = vld [vmem:[%s1431_s2] sm:$0xff]  ;;  %vm254_vm0 = vcmask 1043456   ;;  %vm247_vm1 = vcmask 31744  }
  0x14   : > { %1014 = vset.pattern.permute.xlu0 %v1080_v1  ;;  %1015 = vset.pattern.permute.xlu2 %v1080_v1  ;;  %v223_v5 = vld [vmem:[%s1430_s1] sm:$0xff]  ;;  %v224_v9 = vld [vmem:[%s1430_s1 + $0x8] sm:$0xff]  ;;  %vm332_vm2 = vcmask 703488   ;;  %vm345_vm3 = vcmask 261120   ;;  %vm620_vm4 = vcmask 744448   ;;  %vm579_vm5 = vcmask 752640  }
  0x15   : > { %236 = vperm.xlu0 %1014, %v228_v0   ;;  %s964_s8 = smul.u32 12, %s219_s7  ;;  %s1086_s7 = smov 126   ;;  %vm538_vm6 = vcmask 883712   ;;  %vm661_vm7 = vcmask 736256   ;;  %vm497_vm8 = vcmask 891904   ;;  %vm456_vm9 = vcmask 900096  }
  0x16   : > { %vm415_vm10 = vcmask 1031168   ;;  %vm374_vm11 = vcmask 1039360   ;;  %vm740_vm12 = vcmask 130048  }
  0x17   : > { %s222_s11 = scalar_lea.vmem %s1429_s0, %s964_s8  ;;  %s1087_s8 = smov 109  }
  0x18   : > { %v225_v2 = vld [vmem:[%s222_s11] sm:$0xff]  ;;  %v226_v3 = vld [vmem:[%s222_s11 + $0x8] sm:$0xf] }
  0x19   : > { %241 = vst [vmem:[#allocation1] ss:$2 sm:$0xff] %v225_v2 }
  0x1a   : > { %243 = vst [vmem:[#allocation1 + $0x10] ss:$2 sm:$0xff] %v226_v3 }
  0x1d   : > { %231 = vperm.xlu0 %1014, %v227_v4  }
  0x20   : > { %v244_v6 = vld.sshfl [vmem:[#allocation1] sm:$0xff pattern:$0x75316420]  ;;  %v245_v7 = vld.sshfl [vmem:[#allocation1 + $0x8] sm:$0xff pattern:$0x75316420] }
  0x21   : > { %948 = vmatpush.msk.msra.mxu0 %vm254_vm0, %v244_v6  ;;  %951 = vmatpush.msk.msra.mxu1 %vm254_vm0, %v245_v7  ;;  %v246_v8 = vld.sshfl [vmem:[#allocation1 + $0x10] sm:$0xff pattern:$0x75316420] }
  0x22   : > { %954 = vmatpush.msk.msra.mxu2 %vm254_vm0, %v246_v8  ;;  %949 = vmatmul.msk.f32.vlgmr.msra.gmra.mxu0 %vm247_vm1, %v223_v5 }
  0x23   : > { %952 = vmatmul.msk.f32.vlgmr.msra.gmra.mxu1 %vm247_vm1, %v223_v5  ;;  %955 = vmatmul.msk.f32.vlgmr.msra.gmra.mxu2 %vm247_vm1, %v223_v5 }
  0x2a   : > { %950 = vmatmul.msk.f32.gmra.mxu0 %vm247_vm1, %v224_v9 }
  0x2b   : > { %953 = vmatmul.msk.f32.gmra.mxu1 %vm247_vm1, %v224_v9  ;;  %956 = vmatmul.msk.f32.gmra.mxu2 %vm247_vm1, %v224_v9 }
  0x87   : > { %v237_v10 = vpop.permute.xlu0 %236 }
  0x8f   : > { %v232_v11 = vpop.permute.xlu0 %231 }
  0x9f   : > { %v278_v12 = vpop.f32.mrf.mxu0 }
  0xa0   : > { %v1184_v13 = vadd.f32 %v278_v12, %v232_v11  ;;  %v301_v14 = vpop.f32.mrf.mxu1 }
  0xa1   : > { %v1186_v15 = vadd.f32 %v301_v14, %v232_v11 }
  0xa2   : > { %649 = vrot.lane.b32.xlu1 %v1184_v13, %s1081_s23  ;;  %608 = vrot.lane.b32.xlu2 %v1184_v13, %s1082_s25 }
  0xa3   : > { %569 = vrot.lane.b32.xlu0 %v1186_v15, %s1083_s26 }
  0xa6   : > { %v324_v16 = vpop.f32.mrf.mxu2 }
  0xa7   : > { %v325_v17 = vadd.f32 %v324_v16, %v232_v11  ;;  %v281_v18 = vpop.f32.mrf.mxu0 }
  0xa8   : > { %v1194_v19 = vadd.f32 %v281_v18, %v237_v10  ;;  %v304_v20 = vpop.f32.mrf.mxu1 }
  0xa9   : > { %333 = vst.msk [vmem:[#allocation2 + $0x10] sm:$0xff] %vm332_vm2, %v325_v17  ;;  %v1197_v21 = vadd.f32 %v304_v20, %v237_v10 }
  0xaa   : > { %446 = vrot.lane.b32.xlu1 %v1186_v15, %s1084_s30  ;;  %610 = vrot.lane.b32.xlu2 %v1186_v15, %s1082_s25 }
  0xab   : > { %528 = vrot.lane.b32.xlu0 %v1186_v15, %s1085_s6 }
  0xae   : > { %v327_v22 = vpop.f32.mrf.mxu2 }
  0xaf   : > { %v328_v23 = vadd.f32 %v327_v22, %v237_v10  ;;  %v1337_v22 = vld [vmem:[%s1432_s3 + $0x8] sm:$0xff] }
  0xb0   : > { %v1205_v24 = vld [vmem:[#allocation2 + $0x10] sm:$0xff] }
  0xb1   : > { %336 = vst.msk [vmem:[#allocation2 + $0x28] sm:$0xff] %vm332_vm2, %v328_v23 }
  0xb2   : > { %405 = vrot.lane.b32.xlu1 %v1186_v15, %s1086_s7  ;;  %567 = vrot.lane.b32.xlu2 %v1184_v13, %s1083_s26  ;;  %346 = vst.msk [vmem:[#allocation3 + $0x10] sm:$0xff] %vm345_vm3, %v1205_v24 }
  0xb3   : > { %487 = vrot.lane.b32.xlu0 %v1186_v15, %s1087_s8 }
  0xb8   : > { %v601_v25 = vld [vmem:[#allocation2 + $0x28] sm:$0xff] }
  0xb9   : > { %349 = vst.msk [vmem:[#allocation3 + $0x28] sm:$0xff] %vm345_vm3, %v601_v25 }
  0xba   : > { %612 = vrot.lane.b32.xlu1 %v1205_v24, %s1082_s25  ;;  %526 = vrot.lane.b32.xlu2 %v1184_v13, %s1085_s6 }
  0xbb   : > { %444 = vrot.lane.b32.xlu0 %v1184_v13, %s1084_s30 }
  0xc2   : > { %571 = vrot.lane.b32.xlu1 %v1205_v24, %s1083_s26  ;;  %485 = vrot.lane.b32.xlu2 %v1184_v13, %s1087_s8 }
  0xc3   : > { %403 = vrot.lane.b32.xlu0 %v1184_v13, %s1086_s7 }
  0xca   : > { %614 = vrot.lane.b32.xlu1 %v1194_v19, %s1082_s25  ;;  %651 = vrot.lane.b32.xlu2 %v1186_v15, %s1081_s23 }
  0xcb   : > { %530 = vrot.lane.b32.xlu0 %v1205_v24, %s1085_s6 }
  0xd2   : > { %616 = vrot.lane.b32.xlu1 %v1197_v21, %s1082_s25  ;;  %489 = vrot.lane.b32.xlu2 %v1205_v24, %s1087_s8 }
  0xd3   : > { %448 = vrot.lane.b32.xlu0 %v1205_v24, %s1084_s30 }
  0xda   : > { %575 = vrot.lane.b32.xlu1 %v1197_v21, %s1083_s26  ;;  %532 = vrot.lane.b32.xlu2 %v1194_v19, %s1085_s6 }
  0xdb   : > { %573 = vrot.lane.b32.xlu0 %v1194_v19, %s1083_s26 }
  0xe2   : > { %450 = vrot.lane.b32.xlu1 %v1194_v19, %s1084_s30  ;;  %491 = vrot.lane.b32.xlu2 %v1194_v19, %s1087_s8 }
  0xe3   : > { %534 = vrot.lane.b32.xlu0 %v1197_v21, %s1085_s6 }
  0xea   : > { %411 = vrot.lane.b32.xlu1 %v1197_v21, %s1086_s7  ;;  %655 = vrot.lane.b32.xlu2 %v1194_v19, %s1081_s23 }
  0xeb   : > { %493 = vrot.lane.b32.xlu0 %v1197_v21, %s1087_s8 }
  0xf2   : > { %368 = vrot.lane.b32.xlu1 %v1194_v19, %s1088_s9  ;;  %452 = vrot.lane.b32.xlu2 %v1197_v21, %s1084_s30 }
  0xf3   : > { %657 = vrot.lane.b32.xlu0 %v1197_v21, %s1081_s23 }
  0xfa   : > { %618 = vrot.lane.b32.xlu1 %v601_v25, %s1082_s25  ;;  %370 = vrot.lane.b32.xlu2 %v1197_v21, %s1088_s9  ;;  %s965_s25 = smul.u32 24, %s1140_s22 }
  0xfb   : > { %409 = vrot.lane.b32.xlu0 %v1194_v19, %s1086_s7 }
  0xfc   : > { %v609_v26 = vpop.permute.xlu2 %608 }
 0x102   : > { %577 = vrot.lane.b32.xlu1 %v601_v25, %s1083_s26  ;;  %362 = vrot.lane.b32.xlu2 %v1184_v13, %s1088_s9 }
 0x103   : > { %364 = vrot.lane.b32.xlu0 %v1186_v15, %s1088_s9 }
 0x104   : > { %v611_v27 = vpop.permute.xlu2 %610 }
 0x105   : > { %v621_v28 = vsel %vm620_vm4, %v609_v26, %v611_v27 }
 0x10a   : > { %536 = vrot.lane.b32.xlu1 %v601_v25, %s1085_s6  ;;  %495 = vrot.lane.b32.xlu2 %v601_v25, %s1087_s8  ;;  %s879_s6 = scalar_lea.hbm %s1434_s5, %s965_s25 }
 0x10b   : > { %659 = vrot.lane.b32.xlu0 %v601_v25, %s1081_s23  ;;  %s883_s8 = sshll.u32 %s879_s6, 4  ;;  %s884_s8 = int_to_ptr.hbm [resolvable:$true] %s883_s8 }
 0x10c   : > { %v568_v29 = vpop.permute.xlu2 %567  ;;  %s1030_s22 = sshra.s32 %s884_s8, 4  ;;  %s1031_s22 = int_to_ptr.hbm [resolvable:$true] %s1030_s22 }
 0x10d   : > { %s1032_s10 = scalar_lea.hbm %s1031_s22, 24  ;;  %p1037_p0 = scmp.lt.s32.totalorder %s1031_s22, %s1434_s5 }
 0x10e   : > { %p1033_p11 = scmp.ne.s32.totalorder %s1031_s22, %s1032_s10  ;;  %p1038_p1 = scmp.lt.s32.totalorder %s1036_s13, %s1032_s10 }
 0x110   : > { %p1034_p12 = pnand %p1033_p11, %p1157_p5  ;;  %p1039_p2 = por %p1038_p1, %p1037_p0 }
 0x112   : > { %653 = vrot.lane.b32.xlu1 %v1205_v24, %s1081_s23  ;;  %454 = vrot.lane.b32.xlu2 %v601_v25, %s1084_s30  ;;  %s217_s23 = scalar_lea.vmem [#allocation4], %s963_s17  ;;  %p1035_p13 = pneg %p1034_p12 }
 0x113   : > { %372 = vrot.lane.b32.xlu0 %v601_v25, %s1088_s9 }
 0x114   : > { %v650_v30 = vpop.permute.xlu1 %649  ;;  %v527_v31 = vpop.permute.xlu2 %526  ;;  %p1040_p3 = pnand %p1039_p2, %p1035_p13 }
 0x115   : > { %v570_v32 = vpop.permute.xlu0 %569 }
 0x116   : > { %v580_v33 = vsel %vm579_vm5, %v568_v29, %v570_v32 }
 0x11a   : > { %413 = vrot.lane.b32.xlu1 %v601_v25, %s1086_s7  ;;  %407 = vrot.lane.b32.xlu2 %v1205_v24, %s1086_s7  ;;  %s881_s7 = sshll.u32 %s217_s23, 4  ;;  %s882_s7 = int_to_ptr.vmem [resolvable:$true] %s881_s7 }
 0x11c   : > { %v447_v34 = vpop.permute.xlu1 %446  ;;  %v486_v35 = vpop.permute.xlu2 %485 }
 0x11d   : > { %v529_v36 = vpop.permute.xlu0 %528 }
 0x11e   : > { %v539_v37 = vsel %vm538_vm6, %v527_v31, %v529_v36 }
 0x122   : > { %366 = vrot.lane.b32.xlu1 %v1205_v24, %s1088_s9  ;;  %s868_s9 = scalar_lea.sflag [#allocation5], %s215_s16 }
 0x124   : > { %v1290_v38 = vpop.permute.xlu1 %405  ;;  %v1292_v39 = vpop.permute.xlu2 %651 }
 0x125   : > { %v488_v40 = vpop.permute.xlu0 %487  ;;  %v662_v41 = vsel %vm661_vm7, %v650_v30, %v1292_v39 }
 0x126   : > { %v498_v42 = vsel %vm497_vm8, %v486_v35, %v488_v40 }
 0x12c   : > { %v613_v43 = vpop.permute.xlu1 %612  ;;  %v490_v44 = vpop.permute.xlu2 %489 }
 0x12d   : > { %v1298_v45 = vsel %vm620_vm4, %v611_v27, %v613_v43  ;;  %633 = vst.msk [vmem:[#allocation3 + $0x160] sm:$0xff] %vm345_vm3, %v613_v43  ;;  %v1302_v46 = vsel %vm497_vm8, %v488_v40, %v490_v44  ;;  %v445_v47 = vpop.permute.xlu0 %444 }
 0x12e   : > { %v457_v48 = vsel %vm456_vm9, %v445_v47, %v447_v34  ;;  %510 = vst.msk [vmem:[#allocation3 + $0xd0] sm:$0xff] %vm345_vm3, %v490_v44 }
 0x134   : > { %v572_v49 = vpop.permute.xlu1 %571  ;;  %v533_v50 = vpop.permute.xlu2 %532 }
 0x135   : > { %v1307_v51 = vsel %vm579_vm5, %v570_v32, %v572_v49  ;;  %592 = vst.msk [vmem:[#allocation3 + $0x130] sm:$0xff] %vm345_vm3, %v572_v49  ;;  %v404_v52 = vpop.permute.xlu0 %403 }
 0x136   : > { %v416_v53 = vsel %vm415_vm10, %v404_v52, %v1290_v38 }
 0x13c   : > { %v615_v54 = vpop.permute.xlu1 %614  ;;  %v492_v55 = vpop.permute.xlu2 %491 }
 0x13d   : > { %v531_v56 = vpop.permute.xlu0 %530 }
 0x13e   : > { %v1313_v57 = vsel %vm538_vm6, %v529_v36, %v531_v56  ;;  %551 = vst.msk [vmem:[#allocation3 + $0x100] sm:$0xff] %vm345_vm3, %v531_v56  ;;  %v724_v36 = vld [vmem:[#allocation3 + $0x160] sm:$0xff] }
 0x144   : > { %v617_v58 = vpop.permute.xlu1 %616  ;;  %v656_v59 = vpop.permute.xlu2 %655 }
 0x145   : > { %v623_v60 = vsel %vm620_vm4, %v615_v54, %v617_v58  ;;  %v449_v61 = vpop.permute.xlu0 %448 }
 0x146   : > { %v1318_v62 = vsel %vm456_vm9, %v447_v34, %v449_v61  ;;  %744 = vmatpush.msra.mxu3 %v623_v60  ;;  %469 = vst.msk [vmem:[#allocation3 + $0xa0] sm:$0xff] %vm345_vm3, %v449_v61 }
 0x148   : > { %745 = vmatpush.msra.mxu3 %v621_v28 }
 0x14c   : > { %v576_v63 = vpop.permute.xlu1 %575  ;;  %v453_v0 = vpop.permute.xlu2 %452 }
 0x14d   : > { %v574_v1 = vpop.permute.xlu0 %573  ;;  %v700_v56 = vld [vmem:[#allocation3 + $0xa0] sm:$0xff] }
 0x14e   : > { %v582_v2 = vsel %vm579_vm5, %v574_v1, %v576_v63 }
 0x14f   : > { %746 = vmatpush.msra.mxu3 %v582_v2 }
 0x151   : > { %747 = vmatpush.msra.mxu3 %v580_v33 }
 0x154   : > { %v451_v3 = vpop.permute.xlu1 %450  ;;  %v1322_v4 = vpop.permute.xlu2 %370 }
 0x155   : > { %v459_v5 = vsel %vm456_vm9, %v451_v3, %v453_v0  ;;  %v535_v6 = vpop.permute.xlu0 %534 }
 0x156   : > { %v541_v7 = vsel %vm538_vm6, %v533_v50, %v535_v6  ;;  %v712_v50 = vld [vmem:[#allocation3 + $0x100] sm:$0xff] }
 0x157   : > { %748 = vmatpush.msra.mxu3 %v541_v7 }
 0x159   : > { %749 = vmatpush.msra.mxu3 %v539_v37  ;;  %v1362_v37 = vld [vmem:[%s1432_s3] sm:$0xff] }
 0x15c   : > { %v1326_v8 = vpop.permute.xlu1 %411  ;;  %v363_v9 = vpop.permute.xlu2 %362 }
 0x15d   : > { %v494_v10 = vpop.permute.xlu0 %493 }
 0x15e   : > { %v500_v11 = vsel %vm497_vm8, %v492_v55, %v494_v10 }
 0x15f   : > { %750 = vmatpush.msra.mxu3 %v500_v11 }
 0x161   : > { %751 = vmatpush.msra.mxu3 %v498_v42 }
 0x163   : > { %752 = vmatpush.msra.mxu3 %v459_v5 }
 0x164   : > { %v369_v12 = vpop.permute.xlu1 %368  ;;  %v496_v14 = vpop.permute.xlu2 %495 }
 0x165   : > { %v377_v16 = vsel %vm374_vm11, %v369_v12, %v1322_v4  ;;  %v658_v17 = vpop.permute.xlu0 %657  ;;  %v501_v18 = vsel %vm497_vm8, %v494_v10, %v496_v14  ;;  %513 = vst.msk [vmem:[#allocation3 + $0xe8] sm:$0xff] %vm345_vm3, %v496_v14  ;;  %753 = vmatpush.msra.mxu3 %v457_v48 }
 0x166   : > { %v664_v20 = vsel %vm661_vm7, %v656_v59, %v658_v17 }
 0x167   : > { %778 = vmatpush.msrb.mxu2 %v664_v20 }
 0x169   : > { %779 = vmatpush.msrb.mxu2 %v662_v41 }
 0x16a   : > { %957 = vmatmul.msk.f32.vlgmr.msrb.gmra.mxu2 %vm740_vm12, %v1337_v22 }
 0x16c   : > { %v619_v23 = vpop.permute.xlu1 %618  ;;  %v455_v24 = vpop.permute.xlu2 %454 }
 0x16d   : > { %v624_v25 = vsel %vm620_vm4, %v617_v58, %v619_v23  ;;  %636 = vst.msk [vmem:[#allocation3 + $0x178] sm:$0xff] %vm345_vm3, %v619_v23  ;;  %v410_v26 = vpop.permute.xlu0 %409  ;;  %v460_v27 = vsel %vm456_vm9, %v453_v0, %v455_v24  ;;  %v682_v0 = vld [vmem:[#allocation3 + $0x10] sm:$0xff] }
 0x16e   : > { %v418_v28 = vsel %vm415_vm10, %v410_v26, %v1326_v8  ;;  %784 = vmatpush.msrb.mxu1 %v624_v25  ;;  %472 = vst.msk [vmem:[#allocation3 + $0xb8] sm:$0xff] %vm345_vm3, %v455_v24 }
 0x16f   : > { %754 = vmatpush.msra.mxu3 %v418_v28 }
 0x170   : > { %785 = vmatpush.msrb.mxu1 %v1298_v45 }
 0x171   : > { %755 = vmatpush.msra.mxu3 %v416_v53 }
 0x173   : > { %756 = vmatpush.msra.mxu3 %v377_v16 }
 0x174   : > { %v578_v29 = vpop.permute.xlu1 %577  ;;  %v408_v30 = vpop.permute.xlu2 %407  ;;  %v727_v31 = vld [vmem:[#allocation3 + $0x178] sm:$0xff] }
 0x175   : > { %v583_v32 = vsel %vm579_vm5, %v576_v63, %v578_v29  ;;  %595 = vst.msk [vmem:[#allocation3 + $0x148] sm:$0xff] %vm345_vm3, %v578_v29  ;;  %v1350_v33 = vpop.permute.xlu0 %364  ;;  %v417_v34 = vsel %vm415_vm10, %v1290_v38, %v408_v30  ;;  %824 = vmatpush.msrb.mxu0 %v727_v31  ;;  %v703_v53 = vld [vmem:[#allocation3 + $0xb8] sm:$0xff]  ;;  %v685_v63 = vld [vmem:[#allocation3 + $0x28] sm:$0xff] }
 0x176   : > { %v375_v35 = vsel %vm374_vm11, %v363_v9, %v1350_v33  ;;  %786 = vmatpush.msrb.mxu1 %v583_v32  ;;  %428 = vst.msk [vmem:[#allocation3 + $0x70] sm:$0xff] %vm345_vm3, %v408_v30 }
 0x177   : > { %825 = vmatpush.msrb.mxu0 %v724_v36  ;;  %757 = vmatpush.msra.mxu3 %v375_v35 }
 0x178   : > { %787 = vmatpush.msrb.mxu1 %v1307_v51 }
 0x179   : > { %758 = vmatpush.msra.mxu3 %v1194_v19  ;;  %v718_v19 = vld [vmem:[#allocation3 + $0x130] sm:$0xff] }
 0x17b   : > { %759 = vmatpush.msra.mxu3 %v1184_v13  ;;  %v734_v13 = vld [vmem:[%s1433_s4] sm:$0xff] }
 0x17c   : > { %v537_v38 = vpop.permute.xlu1 %536  ;;  %v721_v40 = vld [vmem:[#allocation3 + $0x148] sm:$0xff]  ;;  %760 = vmatmul.f32.vlgmr.msra.gmra.mxu3 %v1362_v37  ;;  %737 = vperm.xlu2 %1015, %v734_v13  }
 0x17d   : > { %v542_v41 = vsel %vm538_vm6, %v535_v6, %v537_v38  ;;  %554 = vst.msk [vmem:[#allocation3 + $0x118] sm:$0xff] %vm345_vm3, %v537_v38  ;;  %v660_v42 = vpop.permute.xlu0 %659  ;;  %826 = vmatpush.msrb.mxu0 %v721_v40  ;;  %v694_v60 = vld [vmem:[#allocation3 + $0x70] sm:$0xff] }
 0x17e   : > { %v665_v43 = vsel %vm661_vm7, %v658_v17, %v660_v42  ;;  %788 = vmatpush.msrb.mxu1 %v542_v41  ;;  %677 = vst.msk [vmem:[#allocation3 + $0x1a8] sm:$0xff] %vm345_vm3, %v660_v42 }
 0x17f   : > { %827 = vmatpush.msrb.mxu0 %v718_v19  ;;  %818 = vmatpush.msra.mxu2 %v665_v43 }
 0x180   : > { %789 = vmatpush.msrb.mxu1 %v1313_v57 }
 0x182   : > { %790 = vmatpush.msrb.mxu1 %v501_v18 }
 0x184   : > { %v654_v44 = vpop.permute.xlu1 %653  ;;  %v715_v45 = vld [vmem:[#allocation3 + $0x118] sm:$0xff]  ;;  %791 = vmatpush.msrb.mxu1 %v1302_v46  ;;  %v709_v46 = vld [vmem:[#allocation3 + $0xe8] sm:$0xff] }
 0x185   : > { %v663_v47 = vsel %vm661_vm7, %v1292_v39, %v654_v44  ;;  %674 = vst.msk [vmem:[#allocation3 + $0x190] sm:$0xff] %vm345_vm3, %v654_v44  ;;  %v373_v48 = vpop.permute.xlu0 %372  ;;  %828 = vmatpush.msrb.mxu0 %v715_v45  ;;  %v733_v51 = vld [vmem:[#allocation3 + $0x1a8] sm:$0xff]  ;;  %v706_v39 = vld [vmem:[#allocation3 + $0xd0] sm:$0xff] }
 0x186   : > { %v378_v49 = vsel %vm374_vm11, %v1322_v4, %v373_v48  ;;  %792 = vmatpush.msrb.mxu1 %v460_v27  ;;  %819 = vmatpush.msra.mxu2 %v663_v47  ;;  %390 = vst.msk [vmem:[#allocation3 + $0x58] sm:$0xff] %vm345_vm3, %v373_v48 }
 0x187   : > { %829 = vmatpush.msrb.mxu0 %v712_v50  ;;  %958 = vmatmul.msk.f32.vlgmr.msra.gmra.mxu2 %vm740_vm12, %v1337_v22 }
 0x188   : > { %858 = vmatpush.msrb.mxu2 %v733_v51  ;;  %793 = vmatpush.msrb.mxu1 %v1318_v62 }
 0x189   : > { %830 = vmatpush.msrb.mxu0 %v709_v46 }
 0x18b   : > { %831 = vmatpush.msrb.mxu0 %v706_v39 }
 0x18c   : > { %v414_v52 = vpop.permute.xlu1 %413  ;;  %v730_v54 = vld [vmem:[#allocation3 + $0x190] sm:$0xff] }
 0x18d   : > { %v419_v55 = vsel %vm415_vm10, %v1326_v8, %v414_v52  ;;  %431 = vst.msk [vmem:[#allocation3 + $0x88] sm:$0xff] %vm345_vm3, %v414_v52  ;;  %832 = vmatpush.msrb.mxu0 %v703_v53  ;;  %859 = vmatpush.msrb.mxu2 %v730_v54  ;;  %v691_v61 = vld [vmem:[#allocation3 + $0x58] sm:$0xff] }
 0x18e   : > { %794 = vmatpush.msrb.mxu1 %v419_v55 }
 0x18f   : > { %833 = vmatpush.msrb.mxu0 %v700_v56  ;;  %959 = vmatmul.msk.f32.vlgmr.msrb.gmra.mxu2 %vm740_vm12, %v1337_v22 }
 0x190   : > { %795 = vmatpush.msrb.mxu1 %v417_v34 }
 0x192   : > { %796 = vmatpush.msrb.mxu1 %v378_v49 }
 0x194   : > { %v367_v57 = vpop.permute.xlu1 %366  ;;  %v697_v58 = vld [vmem:[#allocation3 + $0x88] sm:$0xff] }
 0x195   : > { %v376_v59 = vsel %vm374_vm11, %v1350_v33, %v367_v57  ;;  %387 = vst.msk [vmem:[#allocation3 + $0x40] sm:$0xff] %vm345_vm3, %v367_v57  ;;  %834 = vmatpush.msrb.mxu0 %v697_v58 }
 0x196   : > { %797 = vmatpush.msrb.mxu1 %v376_v59 }
 0x197   : > { %835 = vmatpush.msrb.mxu0 %v694_v60 }
 0x198   : > { %798 = vmatpush.msrb.mxu1 %v1197_v21 }
 0x199   : > { %836 = vmatpush.msrb.mxu0 %v691_v61 }
 0x19a   : > { %799 = vmatpush.msrb.mxu1 %v1186_v15 }
 0x19b   : > { %800 = vmatmul.f32.vlgmr.msrb.gmra.mxu1 %v1362_v37 }
 0x19c   : > { %v688_v62 = vld [vmem:[#allocation3 + $0x40] sm:$0xff] }
 0x19d   : > { %837 = vmatpush.msrb.mxu0 %v688_v62 }
 0x19f   : > { %838 = vmatpush.msrb.mxu0 %v685_v63 }
 0x1a1   : > { %839 = vmatpush.msrb.mxu0 %v682_v0 }
 0x1a2   : > { %840 = vmatmul.f32.vlgmr.msrb.gmra.mxu0 %v1362_v37 }
 0x1d6   : > { %v738_v1 = vpop.permute.xlu2 %737 }
 0x1ed   : > { %v781_v3 = vpop.f32.mrf.mxu2 }
 0x1ff   : > { %v761_v2 = vpop.f32.mrf.mxu3 }
 0x200   : > { %v762_v21 = vadd.f32 %v761_v2, %v738_v1 }
 0x202   : > { %v782_v4 = vadd.f32 %v781_v3, %v762_v21 }
 0x204   : > { %864 = vst [vmem:[%s217_s23] sm:$0xff] %v782_v4 }
 0x20a   : > { %v821_v15 = vpop.f32.mrf.mxu2 }
 0x212   : > { %v861_v9 = vpop.f32.mrf.mxu2 }
 0x218   : > { %v801_v5 = vpop.f32.mrf.mxu1 }
 0x219   : > { %v802_v6 = vadd.f32 %v801_v5, %v738_v1 }
 0x21b   : > { %v822_v7 = vadd.f32 %v821_v15, %v802_v6 }
 0x21d   : > { %865 = vst [vmem:[%s217_s23 + $0x8] sm:$0xff] %v822_v7 }
 0x21f   : > { %v841_v8 = vpop.f32.mrf.mxu0 }
 0x220   : > { %v842_v10 = vadd.f32 %v841_v8, %v738_v1 }
 0x222   : > { %v862_v11 = vadd.f32 %v861_v9, %v842_v10 }
 0x224   : > { %866 = vst.msk [vmem:[%s217_s23 + $0x10] sm:$0xff] %vm345_vm3, %v862_v11 }
 0x225   : > { %1043 = shalt.err (!%p1040_p3)
}
 0x226   : > { %966 = dma.vmem_to_hbm [thread:$0]  (%p1157_p5), %s882_s7, 384, %s884_s8, %s868_s9  }
 0x227 PF: > { %p972_p4 = scmp.ge.s32.totalorder %s1078_s21, 2  ;;  %s895_s16 = sand.u32 1, %s1066_s18  }
 0x228   : > { %s896_s17 = scalar_lea.sflag [#allocation5], %s895_s16 }
 0x229   : > { %p969_p7 = pnand %p972_p4, %p1161_p6 }
 0x22b   : > { %p970_p8 = pneg %p969_p7 }
 0x22d   : > { %1061 = dma.done.wait (%p970_p8), %s896_s17, 384  }
 0x22e   : > { %1063 = vsyncadd (%p970_p8), %s896_s17, 4294966912  ;;  %p15_p9 = scmp.ge.s32.totalorder %s1144_s24, 4   ;;  %s1437_s18 = smov %s1070_s19 }
 0x22f   : > { %s1438_s19 = smov %s1074_s20  ;;  %s1439_s20 = smov %s1155_s27 }
 0x230   : > { %s1440_s21 = smov %s1144_s24  ;;  %17 = sbr.rel (!%p15_p9) target bundleno = 3 (0x3), region = 76 }
 0x235   :  { %902 = vsyncpa [#allocation5], 1 }
 0x236   :  { %904 = vsyncpa [#allocation5 + $0x1], 1 }

</bundles_post_ra>
